<compile_context>
chip_gen: v5e
topology: v5e:2x2
jax: 0.10.0
libtpu: 0.0.40
codegen_flags: <defaults>
</compile_context>

<pallas_src>
import jax
import jax.numpy as jnp
from jax.experimental import pallas as pl
from jax.experimental.pallas import tpu as pltpu


def _round_up(n, m):
    return ((n + m - 1) // m) * m


def _affine_kernel(w_ref, b_ref, x_ref, o_ref):
    # x_ref: (tile_b, in)   w_ref: (in, out)   b_ref: (1, out)   o_ref: (tile_b, out)
    o_ref[...] = (
        jnp.dot(x_ref[...], w_ref[...], preferred_element_type=jnp.float32)
        + b_ref[...]
    ).astype(o_ref.dtype)


def fold_params(params):
    """Fold the activation-free Linear chain into one (in, out) W and (out,) b."""
    w, b = params[0]
    w = w.astype(jnp.float32)
    b = b.astype(jnp.float32)
    for (wi, bi) in params[1:]:
        wi = wi.astype(jnp.float32)
        bi = bi.astype(jnp.float32)
        w = w @ wi
        b = b @ wi + bi
    return w, b


# VMEM sizing (natural layout): an f32 (tile_b, in=10) input block pads its last
# dim to 128 lanes -> 512 B per tile row; the (tile_b, out=2) output block pads
# the same way; x2 each for double buffering => ~2048 B of VMEM per tile row.
_VMEM_BYTES_PER_TILE_ROW = 2 * (128 * 4) + 2 * (128 * 4)   # 2048
_SCOPED_VMEM_LIMIT = 32 * 1024 * 1024    # explicit scoped limit (safe on v5e/v6e/v7x)
_VMEM_TILE_BUDGET = 24 * 1024 * 1024     # buffer budget, headroom under the limit


def _pick_tile(batch, batch_tile):
    # Largest tile that fits the VMEM budget ...
    max_tile_vmem = _VMEM_TILE_BUDGET // _VMEM_BYTES_PER_TILE_ROW      # ~12288 rows
    # ... capped so the grid has >= 2 steps (v7x: split across the 2 TensorCores),
    # and always a multiple of 8 so the (tile_b, in) block obeys the (8,128) rule.
    two_step_cap = _round_up(pl.cdiv(batch, 2), 8)
    tile = min(_round_up(batch_tile, 8), max_tile_vmem, two_step_cap)
    return max(tile, 8)


def space_ship_forward(x, params, *, batch_tile=16384, min_pallas_batch=4096):
    """x: (batch, enemyNum+1, 2) float32.  params: list of (W(in,out), b(out,))."""
    batch = x.shape[0]
    x_flat = x.reshape(batch, -1)             # nn.Flatten() -- plain JAX glue

    w, b = fold_params(params)                # (in, out), (out,)
    in_feats, out_feats = w.shape

    if batch < min_pallas_batch:
        # Small batches: the folded affine is a trivial fused XLA op; skip the
        # fixed pallas_call dispatch cost.
        return x_flat @ w + b

    tile_b = _pick_tile(batch, batch_tile)
    grid = (pl.cdiv(batch, tile_b),)          # partial last block: OOB reads are
                                              # discarded, OOB writes are masked.

    out = pl.pallas_call(
        _affine_kernel,
        out_shape=jax.ShapeDtypeStruct((batch, out_feats), jnp.float32),
        grid=grid,
        in_specs=[
            pl.BlockSpec((in_feats, out_feats), lambda i: (0, 0)),   # folded W (resident)
            pl.BlockSpec((1, out_feats), lambda i: (0, 0)),          # folded bias (resident)
            pl.BlockSpec((tile_b, in_feats), lambda i: (i, 0)),      # x batch tile
        ],
        out_specs=pl.BlockSpec((tile_b, out_feats), lambda i: (i, 0)),
        compiler_params=pltpu.CompilerParams(
            dimension_semantics=("parallel",),
            vmem_limit_bytes=_SCOPED_VMEM_LIMIT,
        ),
    )(w, b.reshape(1, out_feats), x_flat)

    return out


def make_params(key, enemy_num=4, consider_gain=False,
                hidden_layer=((5,), (4,), (3,), (2,))):
    """Deterministic init of the Linear stack (weights stored as (in, out))."""
    in_feats = (enemy_num + 1) * 2 if not consider_gain else (enemy_num + 2) * 2
    dims = [in_feats] + [h[0] * 2 for h in hidden_layer] + [2]
    params = []
    for i in range(len(dims) - 1):
        key, kw, kb = jax.random.split(key, 3)
        fan_in, fan_out = dims[i], dims[i + 1]
        bound = 1.0 / jnp.sqrt(fan_in)
        w = jax.random.uniform(kw, (fan_in, fan_out), jnp.float32, -bound, bound)
        bias = jax.random.uniform(kb, (fan_out,), jnp.float32, -bound, bound)
        params.append((w, bias))
    return params


def reference_forward(x, params):
    # Unfolded reference (matches PyTorch layer-by-layer semantics).
    h = x.reshape(x.shape[0], -1)
    for (w, bias) in params:
        h = h @ w + bias
    return h


if __name__ == "__main__":
    key = jax.random.PRNGKey(0)
    key, kx1, kx2 = jax.random.split(key, 3)

    enemy_num = 4
    params = make_params(key, enemy_num=enemy_num)

    # Primary small test (batch=2): force the Pallas path to exercise the kernel.
    x_small = jax.random.normal(kx1, (2, enemy_num + 1, 2), jnp.float32)
    out_small = jax.block_until_ready(
        space_ship_forward(x_small, params, min_pallas_batch=0))
    ref_small = reference_forward(x_small, params)
    assert out_small.shape == (2, 2), out_small.shape
    assert jnp.allclose(out_small, ref_small, atol=1e-5, rtol=1e-4), (out_small, ref_small)

    # Larger test: default routing hits the Pallas path, exercises a 2-step
    # "parallel" grid and a partial (masked) last block (5000 = 2504 + 2496).
    x_big = jax.random.normal(kx2, (5000, enemy_num + 1, 2), jnp.float32)
    out_big = jax.block_until_ready(space_ship_forward(x_big, params))
    ref_big = reference_forward(x_big, params)
    assert out_big.shape == (5000, 2), out_big.shape
    assert jnp.allclose(out_big, ref_big, atol=1e-5, rtol=1e-4), "big-batch mismatch"

    # Small-batch XLA fallback path (default min_pallas_batch).
    out_fb = jax.block_until_ready(space_ship_forward(x_small, params))
    assert jnp.allclose(out_fb, ref_small, atol=1e-5, rtol=1e-4), "fallback mismatch"

    print("KERNEL_OK")
</pallas_src>

<mosaic_0001>
module attributes {stable_mosaic.version = 11 : i64} {
  func.func @_affine_kernel(%arg0: i32, %arg1: memref<10x2xf32, #tpu.memory_space<vmem>>, %arg2: memref<1x2xf32, #tpu.memory_space<vmem>>, %arg3: memref<8x10xf32, #tpu.memory_space<vmem>>, %arg4: memref<8x2xf32, #tpu.memory_space<vmem>>) attributes {dimension_semantics = [#tpu.dimension_semantics<parallel>], iteration_bounds = array<i64: 1>, scalar_prefetch = 0 : i64, scratch_operands = 0 : i64, tpu.core_type = #tpu.core_type<tc>, window_params = [{pipeline_mode = #tpu.pipeline_mode<synchronous>, transform_indices = @transform_0, window_bounds = array<i64: 10, 2>}, {pipeline_mode = #tpu.pipeline_mode<synchronous>, transform_indices = @transform_1, window_bounds = array<i64: 1, 2>}, {transform_indices = @transform_2, window_bounds = array<i64: 8, 10>}, {transform_indices = @transform_3, window_bounds = array<i64: 8, 2>}]} {
    %c0 = arith.constant 0 : index
    %c0_0 = arith.constant 0 : index
    %0 = vector.load %arg3[%c0, %c0_0] : memref<8x10xf32, #tpu.memory_space<vmem>>, vector<8x10xf32>
    %c0_1 = arith.constant 0 : index
    %c0_2 = arith.constant 0 : index
    %1 = vector.load %arg1[%c0_1, %c0_2] : memref<10x2xf32, #tpu.memory_space<vmem>>, vector<10x2xf32>
    %cst = arith.constant dense<0.000000e+00> : vector<8x2xf32>
    %2 = tpu.matmul %0, %1, %cst {dimension_numbers = #tpu.dot_dimension_numbers<[1], [0], [0], [1], [0, 0, 1, 1], [], []>} : vector<8x10xf32>, vector<10x2xf32>, vector<8x2xf32> -> vector<8x2xf32>
    %c0_3 = arith.constant 0 : index
    %c0_4 = arith.constant 0 : index
    %3 = vector.load %arg2[%c0_3, %c0_4] : memref<1x2xf32, #tpu.memory_space<vmem>>, vector<1x2xf32>
    %4 = vector.broadcast %3 : vector<1x2xf32> to vector<8x2xf32>
    %5 = arith.addf %2, %4 : vector<8x2xf32>
    %c0_5 = arith.constant 0 : index
    %c0_6 = arith.constant 0 : index
    %6 = vector.load %arg4[%c0_5, %c0_6] : memref<8x2xf32, #tpu.memory_space<vmem>>, vector<8x2xf32>
    tpu.vector_store %arg4[%c0_5, %c0_6], %5 {strides = array<i32>} : memref<8x2xf32, #tpu.memory_space<vmem>>, vector<8x2xf32>,
    return
  }
  func.func @transform_0(%arg0: i32) -> (i32, i32) {
    %c0_i32 = arith.constant 0 : i32
    %c0_i32_0 = arith.constant 0 : i32
    %c0_i32_1 = arith.constant 0 : i32
    return %c0_i32, %c0_i32_0 : i32, i32
  }
  func.func @transform_1(%arg0: i32) -> (i32, i32) {
    %c0_i32 = arith.constant 0 : i32
    %c0_i32_0 = arith.constant 0 : i32
    %c0_i32_1 = arith.constant 0 : i32
    return %c0_i32, %c0_i32_0 : i32, i32
  }
  func.func @transform_2(%arg0: i32) -> (i32, i32) {
    %c0_i32 = arith.constant 0 : i32
    %c0_i32_0 = arith.constant 0 : i32
    return %arg0, %c0_i32 : i32, i32
  }
  func.func @transform_3(%arg0: i32) -> (i32, i32) {
    %c0_i32 = arith.constant 0 : i32
    %c0_i32_0 = arith.constant 0 : i32
    return %arg0, %c0_i32 : i32, i32
  }
}

</mosaic_0001>

<bundles_post_ra>
// kernel: tpu_custom_call.1
= control target key start
LH: loop header
LB: loop body
LE: loop exit
PB: predicated region body
PF: predicated region fallthrough
CT: control target
= control target key end

     0   :  { %8 = vsyncpa [#allocation3], 0  ;;  %vm26_vm0 = vcmask 1041408   ;;  %vm22_vm1 = vcmask 80896   ;;  %vm50_vm2 = vcmask 15360   ;;  %s140_s0 = inlined_call_operand.vmem [shape: f32[10,2], index: 0, kind: input, shape index: {}]   ;;  %s141_s1 = inlined_call_operand.vmem [shape: f32[1,2], index: 1, kind: input, shape index: {}]   ;;  %s142_s2 = inlined_call_operand.vmem [shape: f32[2,10], index: 2, kind: input, shape index: {}]   ;;  %s143_s3 = inlined_call_operand.hbm [shape: f32[2,2], index: 3, kind: output, shape index: {}]  }
   0x1   :  { %v17_v0 = vld [vmem:[%s140_s0 + $0x8] sm:$0x3]  ;;  %v16_v1 = vld [vmem:[%s140_s0] sm:$0xff] }
   0x2   :  { %70 = vmatpush.msk.msra.mxu0 %vm26_vm0, %v17_v0  ;;  %v15_v2 = vld [vmem:[%s142_s2] sm:$0xff] }
   0x3   :  { %v75_v3 = vld [vmem:[%s141_s1] ss:$0 sm:$0xff] }
   0x4   :  { %45 = vmatpush.msra.mxu0 %v16_v1 }
   0x5   :  { %71 = vmatmul.msk.f32.vlgmr.msra.gmra.mxu0 %vm22_vm1, %v15_v2 }
  0x82   :  { %v47_v4 = vpop.f32.mrf.mxu0 }
  0x83   :  { %v48_v5 = vadd.f32 %v75_v3, %v47_v4 }
  0x85   :  { %51 = vst.msk [vmem:[#allocation2] sm:$0xff] %vm50_vm2, %v48_v5 }
  0x86   :  { %55 = vsyncadd [#allocation3], 96  ;;  %s58_s0 = sshll.u32 %s143_s3, 4  ;;  %s102_s22 = smov [#allocation2]   ;;  %s59_s0 = int_to_ptr.hbm [resolvable:$true] %s58_s0 }
  0x87   :  { %s56_s23 = sshll.u32 %s102_s22, 4  ;;  %s103_s2 = smov 32   ;;  %s57_s23 = int_to_ptr.vmem [resolvable:$true] %s56_s23 }
  0x88   :  { %s104_s24 = smov 2  }
  0x89   :  { %64 = dma.vmem_to_hbm [thread:$0]  %s57_s23, 32, %s59_s0, [#allocation3], %s103_s2, %s103_s2, %s104_s24  }
  0x8a   :  { %100 = dma.done.wait [#allocation3], 128  }
  0x8b   :  { %101 = vsyncadd [#allocation3], 4294967168 }
  0x8c   :  { %69 = vsyncpa [#allocation3], 1 }

</bundles_post_ra>
